<compile_context>
chip_gen: v5e
topology: v5e:2x2
jax: 0.10.0
libtpu: 0.0.40
codegen_flags: <defaults>
</compile_context>

<pallas_src>
import functools

import jax
import jax.numpy as jnp
from jax.experimental import pallas as pl
from jax.experimental.pallas import tpu as pltpu


_LANE = 128
_SUBLANE = 8
_LANE_TILE_MAX = 2048            # lane-axis tile cap (multiple of 128)
_PER_BUFFER_TARGET = 4 << 20     # ~4 MiB per pipeline buffer (85%+ HBM roofline)
_FAST_PATH_BYTES = 1 << 20       # below this, fused XLA add beats kernel launch


def _round_up(n, m):
    return ((n + m - 1) // m) * m


def pe_add_kernel(x_ref, pe_ref, o_ref, *, lane_tile):
    # x_ref : (TB, TC)        input tile (batch rows on sublanes, L*D on lanes)
    # pe_ref: (1, LD_padded)  whole positional-encoding row; constant index_map
    #                         -> DMA'd into VMEM once, resident for all steps
    # o_ref : (TB, TC)        output tile
    j = pl.program_id(1)
    start = j * lane_tile
    if lane_tile % _LANE == 0:
        start = pl.multiple_of(start, _LANE)
    pe_tile = pe_ref[:, pl.ds(start, lane_tile)]          # (1, TC), broadcast over TB
    o_ref[...] = (x_ref[...] + pe_tile).astype(o_ref.dtype)


def _pick_tiles(B, LD, itemsize):
    # Lane tile: full dim if small (always legal), else a 128-multiple cap.
    TC = LD if LD <= _LANE_TILE_MAX else _LANE_TILE_MAX
    # Batch tile: as many rows as fit the per-buffer byte target (multiple of 8).
    rows = max(_SUBLANE, _PER_BUFFER_TARGET // (TC * itemsize))
    TB = B if B <= rows else (rows // _SUBLANE) * _SUBLANE
    # v7x has 2 TensorCores: make sure a 'parallel' axis has >= 2 blocks so both
    # cores get work.  (Only reached for large inputs; tiny ones take the XLA
    # fast path, so splitting never hurts.)
    if pl.cdiv(B, TB) * pl.cdiv(LD, TC) == 1:
        if B >= 2 * _SUBLANE:
            TB = _round_up(pl.cdiv(B, 2), _SUBLANE)
        elif LD >= 2 * _LANE:
            TC = _round_up(pl.cdiv(LD, 2), _LANE)
    return TB, TC


def positional_encoding(x, pe, *, force_pallas=False):
    """x: (B, L, D);  pe: (1, max_len, D) with L <= max_len.  Returns x + pe[:, :L, :]."""
    B, L, D = x.shape
    assert pe.shape[0] == 1 and pe.shape[2] == D and L <= pe.shape[1]

    pe = pe.astype(x.dtype)                 # avoid mixed-dtype promotion in-kernel
    itemsize = jnp.dtype(x.dtype).itemsize
    LD = L * D

    # Small-problem fast path: let XLA fuse the broadcast add.
    if not force_pallas and B * LD * itemsize < _FAST_PATH_BYTES:
        return x + pe[:, :L, :]

    # Lane-dense layout: fold (L, D) into one lane axis (free row-major reshape).
    x2 = x.reshape(B, LD)
    pe2 = pe[0, :L, :].reshape(1, LD)

    TB, TC = _pick_tiles(B, LD, itemsize)
    n_b, n_l = pl.cdiv(B, TB), pl.cdiv(LD, TC)

    # Pad pe's lane axis to a whole number of lane tiles so the in-kernel pl.ds
    # slice never reads past the buffer on a partial edge tile.  pe is tiny
    # (<= max_len*D elements), so this one-time pad is negligible.
    LDp = n_l * TC
    if LDp != LD:
        pe2 = jnp.pad(pe2, ((0, 0), (0, LDp - LD)))

    # Explicit scoped-VMEM budget: double-buffered x in + out (4 tiles) plus the
    # resident pe row plus headroom.  Raising it explicitly keeps the larger
    # tiles legal on v5e's 16 MiB default while staying well under v7x's 64 MiB
    # physical VMEM per core.
    tile_bytes = TB * TC * itemsize
    vmem_limit = 4 * tile_bytes + LDp * itemsize + (8 << 20)
    vmem_limit = int(min(max(vmem_limit, 16 << 20), 48 << 20))

    out2 = pl.pallas_call(
        functools.partial(pe_add_kernel, lane_tile=TC),
        out_shape=jax.ShapeDtypeStruct((B, LD), x.dtype),
        grid=(n_b, n_l),
        in_specs=[
            pl.BlockSpec((TB, TC), lambda i, j: (i, j)),
            # Whole-array pe with a constant index map: fetched once, VMEM-resident.
            pl.BlockSpec((1, LDp), lambda i, j: (0, 0)),
        ],
        out_specs=pl.BlockSpec((TB, TC), lambda i, j: (i, j)),
        compiler_params=pltpu.CompilerParams(
            dimension_semantics=("parallel", "parallel"),
            vmem_limit_bytes=vmem_limit,
        ),
        # TODO(synk): if the caller donates x, add input_output_aliases={0: 0} to
        # reuse x's HBM buffer for the output (halves peak HBM footprint).
    )(x2, pe2)

    return out2.reshape(B, L, D)


def positional_encoding_ref(x, pe):
    """Pure-JAX reference matching the PyTorch forward: x + pe[:, :x.size(1), :]."""
    L = x.shape[1]
    return x + pe[:, :L, :].astype(x.dtype)


if __name__ == "__main__":
    # Shapes implied by the module: batch=2, seq=8, d_model=32, max_len=14.
    B, L, D, MAX_LEN = 2, 8, 32, 14

    key = jax.random.PRNGKey(0)
    kx, kp, kx2 = jax.random.split(key, 3)

    x = jax.random.normal(kx, (B, L, D), dtype=jnp.float32)
    # nn.Parameter is zero-initialized in the module; use random values (as if
    # trained) so the add is actually exercised.
    pe = jax.random.normal(kp, (1, MAX_LEN, D), dtype=jnp.float32)

    # 1) Auto path at the shipped (tiny) shape -> XLA fast path.
    out_small = jax.block_until_ready(positional_encoding(x, pe))
    ref_small = positional_encoding_ref(x, pe)
    assert out_small.shape == (B, L, D)
    assert jnp.allclose(out_small, ref_small, atol=1e-6, rtol=1e-6), \
        f"fast path max abs err {jnp.max(jnp.abs(out_small - ref_small))}"

    # 2) Force the Pallas kernel at the same small shape (compile/run check).
    out_forced = jax.block_until_ready(positional_encoding(x, pe, force_pallas=True))
    assert jnp.allclose(out_forced, ref_small, atol=1e-6, rtol=1e-6), \
        f"forced-pallas max abs err {jnp.max(jnp.abs(out_forced - ref_small))}"

    # 3) Larger batch exercising the tiled, multi-block Pallas path (4 MiB).
    B2 = 4096
    x2 = jax.random.normal(kx2, (B2, L, D), dtype=jnp.float32)
    out_big = jax.block_until_ready(positional_encoding(x2, pe))
    ref_big = positional_encoding_ref(x2, pe)
    assert out_big.shape == (B2, L, D)
    assert jnp.allclose(out_big, ref_big, atol=1e-6, rtol=1e-6), \
        f"tiled path max abs err {jnp.max(jnp.abs(out_big - ref_big))}"

    print("KERNEL_OK")
</pallas_src>

<mosaic_0001>
module attributes {stable_mosaic.version = 11 : i64} {
  func.func @pe_add_kernel(%arg0: i32, %arg1: i32, %arg2: memref<2x128xf32, #tpu.memory_space<vmem>>, %arg3: memref<1x256xf32, #tpu.memory_space<vmem>>, %arg4: memref<2x128xf32, #tpu.memory_space<vmem>>) attributes {dimension_semantics = [#tpu.dimension_semantics<parallel>, #tpu.dimension_semantics<parallel>], iteration_bounds = array<i64: 1, 2>, scalar_prefetch = 0 : i64, scratch_operands = 0 : i64, tpu.core_type = #tpu.core_type<tc>, window_params = [{transform_indices = @transform_0, window_bounds = array<i64: 2, 128>}, {pipeline_mode = #tpu.pipeline_mode<synchronous>, transform_indices = @transform_1, window_bounds = array<i64: 1, 256>}, {transform_indices = @transform_2, window_bounds = array<i64: 2, 128>}]} {
    %c128_i32 = arith.constant 128 : i32
    %0 = arith.muli %arg1, %c128_i32 : i32
    %1 = tpu.assume_multiple %0, 128 : i32
    %c0 = arith.constant 0 : index
    %2 = arith.index_cast %1 : i32 to index
    %3 = vector.load %arg3[%c0, %2] : memref<1x256xf32, #tpu.memory_space<vmem>>, vector<1x128xf32>
    %c0_0 = arith.constant 0 : index
    %c0_1 = arith.constant 0 : index
    %4 = vector.load %arg2[%c0_0, %c0_1] : memref<2x128xf32, #tpu.memory_space<vmem>>, vector<2x128xf32>
    %5 = vector.broadcast %3 : vector<1x128xf32> to vector<2x128xf32>
    %6 = arith.addf %4, %5 : vector<2x128xf32>
    %c0_2 = arith.constant 0 : index
    %c0_3 = arith.constant 0 : index
    %7 = vector.load %arg4[%c0_2, %c0_3] : memref<2x128xf32, #tpu.memory_space<vmem>>, vector<2x128xf32>
    tpu.vector_store %arg4[%c0_2, %c0_3], %6 {strides = array<i32>} : memref<2x128xf32, #tpu.memory_space<vmem>>, vector<2x128xf32>,
    return
  }
  func.func @transform_0(%arg0: i32, %arg1: i32) -> (i32, i32) {
    %c0_i32 = arith.constant 0 : i32
    return %arg0, %arg1 : i32, i32
  }
  func.func @transform_1(%arg0: i32, %arg1: i32) -> (i32, i32) {
    %c0_i32 = arith.constant 0 : i32
    %c0_i32_0 = arith.constant 0 : i32
    %c0_i32_1 = arith.constant 0 : i32
    return %c0_i32, %c0_i32_0 : i32, i32
  }
  func.func @transform_2(%arg0: i32, %arg1: i32) -> (i32, i32) {
    %c0_i32 = arith.constant 0 : i32
    return %arg0, %arg1 : i32, i32
  }
}

</mosaic_0001>

<bundles_post_ra>
// kernel: tpu_custom_call.1
= control target key start
LH: loop header
LB: loop body
LE: loop exit
PB: predicated region body
PF: predicated region fallthrough
CT: control target
= control target key end

     0   :  { %7 = vsyncpa [#allocation3], 0  ;;  %s720_s0 = inlined_call_operand.hbm [shape: f32[2,256], index: 0, kind: input, shape index: {}]   ;;  %s721_s1 = inlined_call_operand.hbm [shape: f32[1,256], index: 1, kind: input, shape index: {}]   ;;  %s722_s2 = inlined_call_operand.hbm [shape: f32[2,256], index: 2, kind: output, shape index: {}]  }
   0x1   :  { %9 = vsyncpa [#allocation3 + $0x1], 0 }
   0x2   :  { %10 = vsyncpa [#allocation6], 0 }
   0x3   :  { %11 = vsyncpa [#allocation4], 0 }
   0x4   :  { %13 = vsyncpa [#allocation4 + $0x1], 0  ;;  %s570_s9 = smov 0   ;;  %s572_s10 = smov 0  }
   0x5   :  { %s574_s11 = smov 0   ;;  %s576_s12 = smov 0  }
   0x6   :  { %s578_s13 = smov 0   ;;  %s580_s14 = smov 0  }
   0x7 LB: > { %s316_s15 = sadd.s32 4294967295, %s552_s14   ;;  %s317_s16 = sadd.s32 4294967294, %s552_s14   ;;  %s552_s14 = sphi %s580_s14, %s19_s14   ;;  %s548_s13 = sphi %s578_s13, %s734_s13   ;;  %s544_s12 = sphi %s576_s12, %s733_s12   ;;  %s540_s11 = sphi %s574_s11, %s732_s11   ;;  %s536_s10 = sphi %s572_s10, %s731_s10   ;;  %s532_s9 = sphi %s570_s9, %s730_s9  }
   0x8   : > { %p53_p0 = scmp.ne.s32.totalorder %s536_s10, %s532_s9  ;;  %p604_p1 = scmp.eq.s32.totalorder %s316_s15, 0 }
   0x9   : > { %p608_p2 = scmp.eq.s32.totalorder %s316_s15, 1  ;;  %p106_p3 = scmp.eq.s32.totalorder %s317_s16, 1 }
   0xa   : > { %p614_p4 = por %p604_p1, %p53_p0  ;;  %p318_p5 = scmp.ge.s32.totalorder %s552_s14, 1 }
   0xb   : > { %p619_p6 = por %p106_p3, %p53_p0  ;;  %p113_p7 = scmp.lt.s32.totalorder %s552_s14, 3 }
   0xc   : > { %s125_s23 = sshll.u32 %s721_s1, 4  ;;  %p320_p9 = scmp.ge.s32.totalorder %s552_s14, 2  ;;  %s126_s23 = int_to_ptr.hbm [resolvable:$true] %s125_s23 }
   0xd   : > { %p627_p8 = pnand %p318_p5, %p113_p7  ;;  %s554_s25 = smov [#allocation5]  }
   0xe   : > { %s127_s26 = sshll.u32 %s554_s25, 4  ;;  %s28_s27 = sadd.s32 1, %s548_s13  ;;  %s128_s26 = int_to_ptr.vmem [resolvable:$true] %s127_s26 }
   0xf   : > { %p340_p10 = pneg %p627_p8  ;;  %p29_p12 = scmp.ge.s32.totalorder %s28_s27, 2 }
  0x10   : > { %s40_s28 = sadd.s32 1, %s540_s11  ;;  %p47_p13 = scmp.ne.s32.totalorder %s540_s11, %s536_s10 }
  0x11   : > { %p341_p11 = pnand %p340_p10, %p604_p1  ;;  %p48_p0 = scmp.eq.s32.totalorder %s552_s14, 0 }
  0x12   : > { %s736_s27 = smov (%p29_p12, %s28_s27), 0  ;;  %p649_p5 = por %p608_p2, %p47_p13 }
  0x13   : > { %343 = dma.hbm_to_vmem [thread:$0]  (!%p341_p11), %s126_s23, 32, %s128_s26, [#allocation6]  }
  0x14   : > { %p643_p3 = por %p48_p0, %p47_p13  ;;  %s36_s3 = ssub.s32 %s548_s13, %s736_s27 }
  0x15   : > { %p353_p7 = scmp.lt.s32.totalorder %s552_s14, 2  ;;  %p38_p10 = scmp.eq.s32.totalorder %s36_s3, 0 }
  0x16   : > { %s138_s4 = sand.u32 1, %s540_s11   ;;  %s322_s7 = sshll.u32 %s548_s13, 1 }
  0x17   : > { %s321_s5 = sshll.u32 %s138_s4, 1  ;;  %s148_s16 = scalar_lea.hbm %s720_s0, %s322_s7 }
  0x18   : > { %s658_s6 = scalar_select %p38_p10, %s540_s11, %s40_s28  }
  0x19   : > { %s142_s21 = scalar_lea.vmem [#allocation2], %s321_s5  ;;  %s150_s18 = sshll.u32 %s148_s16, 4  ;;  %s151_s18 = int_to_ptr.hbm [resolvable:$true] %s150_s18 }
  0x1a   : > { %s152_s22 = sshll.u32 %s142_s21, 4  ;;  %p345_p2 = pnand %p353_p7, %p643_p3  ;;  %s153_s22 = int_to_ptr.vmem [resolvable:$true] %s152_s22 }
  0x1b   : > { %s139_s23 = scalar_lea.sflag [#allocation3], %s138_s4  ;;  %161 = sbr.rel (%p627_p8) target bundleno = 51 (0x33), region = 28 }
  0x1c   : > { %347 = dma.hbm_to_vmem [thread:$0]  (!%p345_p2), %s151_s18, 32, %s153_s22, %s139_s23  }
  0x1d   : > { %s669_s25 = sand.u32 (!%p627_p8), 1, %s536_s10  }
  0x1e   : > { %s324_s26 = sshll.u32 (!%p627_p8), %s669_s25, 1  ;;  %s164_s28 = scalar_lea.sflag (!%p627_p8), [#allocation3], %s669_s25 }
  0x1f   : > { %s167_s3 = scalar_lea.vmem (!%p627_p8), [#allocation2], %s324_s26 }
  0x20   : > { %519 = dma.done.wait (%p614_p4), %s164_s28, 32  }
  0x21   : > { %521 = vsyncadd (%p614_p4), %s164_s28, 4294967264 }
  0x22   : > { %523 = dma.done.wait (%p604_p1), [#allocation6], 32  }
  0x23   : > { %525 = vsyncadd (%p604_p1), [#allocation6], 4294967264  ;;  %s327_s24 = sshll.u32 %s544_s12, 7  ;;  %s329_s4 = sshll.u32 %s544_s12, 1  ;;  %v199_v0 = vld [vmem:[%s167_s3] sm:$0x3] }
  0x24   : > { %s195_s29 = sshra.s32 %s327_s24, 7  ;;  %s218_s8 = scalar_lea.hbm %s722_s2, %s329_s4 }
  0x25   : > { %s193_s15 = scalar_lea.vmem [#allocation7], %s324_s26  ;;  %s222_s16 = sshll.u32 %s218_s8, 4  ;;  %s223_s16 = int_to_ptr.hbm [resolvable:$true] %s222_s16 }
  0x26   : > { %s220_s19 = sshll.u32 %s193_s15, 4  ;;  %s197_s21 = scalar_lea.vmem [#allocation5], %s195_s29  ;;  %s221_s19 = int_to_ptr.vmem [resolvable:$true] %s220_s19 }
  0x27   : > { %v405_v1 = vld [vmem:[%s197_s21] ss:$0 sm:$0xff]  ;;  %s206_s17 = scalar_lea.sflag [#allocation4], %s669_s25  ;;  %s480_s22 = sshra.s32 %s223_s16, 4  ;;  %s481_s22 = int_to_ptr.hbm [resolvable:$true] %s480_s22 }
  0x28   : > { %v203_v2 = vadd.f32 %v405_v1, %v199_v0  ;;  %s482_s18 = scalar_lea.hbm %s481_s22, 2  ;;  %s486_s26 = scalar_lea.hbm %s722_s2, 4 }
  0x29   : > { %p483_p1 = scmp.ne.s32.totalorder %s481_s22, %s482_s18  ;;  %p487_p11 = scmp.lt.s32.totalorder %s481_s22, %s722_s2 }
  0x2a   : > { %204 = vst [vmem:[%s193_s15] sm:$0x3] %v203_v2  ;;  %p488_p12 = scmp.lt.s32.totalorder %s486_s26, %s482_s18 }
  0x2b   : > { %p484_p4 = pnand %p483_p1, %p649_p5 }
  0x2c   : > { %p489_p13 = por %p488_p12, %p487_p11 }
  0x2d   : > { %p485_p8 = pneg %p484_p4 }
  0x2f   : > { %p490_p0 = pnand %p489_p13, %p485_p8 }
  0x31   : > { %493 = shalt.err (!%p490_p0)
}
  0x32   : > { %338 = dma.vmem_to_hbm [thread:$0]  (%p649_p5), %s221_s19, 32, %s223_s16, %s206_s17  }
  0x33 PF: > { %s234_s25 = sand.u32 1, %s532_s9   ;;  %p349_p3 = pnand %p320_p9, %p619_p6 }
  0x34   : > { %s235_s3 = scalar_lea.sflag [#allocation4], %s234_s25 }
  0x35   : > { %p350_p7 = pneg %p349_p3 }
  0x37   : > { %527 = dma.done.wait (%p350_p7), %s235_s3, 32  }
  0x38   : > { %529 = vsyncadd (%p350_p7), %s235_s3, 4294967264  ;;  %s19_s14 = sadd.s32 1, %s552_s14   ;;  %s730_s9 = smov %s536_s10 }
  0x39   : > { %p16_p10 = scmp.ge.s32.totalorder %s19_s14, 4   ;;  %s731_s10 = smov %s540_s11 }
  0x3a   : > { %s732_s11 = smov %s658_s6  ;;  %s733_s12 = smov %s548_s13 }
  0x3b   : > { %s734_s13 = smov %s736_s27  ;;  %18 = sbr.rel (!%p16_p10) target bundleno = 7 (0x7), region = 78 }
  0x40   :  { %241 = vsyncpa [#allocation3], 1 }
  0x41   :  { %243 = vsyncpa [#allocation3 + $0x1], 1 }
  0x42   :  { %244 = vsyncpa [#allocation6], 1 }
  0x43   :  { %245 = vsyncpa [#allocation4], 1 }
  0x44   :  { %247 = vsyncpa [#allocation4 + $0x1], 1 }

</bundles_post_ra>
